<compile_context>
chip_gen: v6e
topology: v6e:2x2x1
jax: 0.10.0
libtpu: 0.0.40
codegen_flags: <defaults>
</compile_context>

<pallas_src>
import functools

import jax
import jax.numpy as jnp
from jax.experimental import pallas as pl
from jax.experimental.pallas import tpu as pltpu


def _round_up(x, m):
    return (x + m - 1) // m * m


def _pick_tile(dim, candidates):
    for c in candidates:
        if dim % c == 0:
            return c
    return dim


def _block_kernel(x_ref, wt_ref, shift_ref, o_ref, acc_ref):
    # x_ref:     (tm, tk)   activations (f32 or bf16)
    # wt_ref:    (tk, tn)   Linear weight^T with BN scale folded in
    # shift_ref: (1, tn)    beta - running_mean * scale   (f32)
    # o_ref:     (tm, tn)   output tile
    # acc_ref:   (tm, tn)   f32 accumulator scratch (persists across K steps)
    k = pl.program_id(2)

    @pl.when(k == 0)
    def _():
        acc_ref[...] = jnp.zeros_like(acc_ref)

    acc_ref[...] += jnp.dot(x_ref[...], wt_ref[...],
                            preferred_element_type=jnp.float32)

    @pl.when(k == pl.num_programs(2) - 1)
    def _():
        y = acc_ref[...] + shift_ref[...]                       # BN (eval) shift
        o_ref[...] = jnp.maximum(y, 0.0).astype(o_ref.dtype)    # ReLU


def fold_params(weight, gamma, beta, running_mean, running_var, eps=1e-5,
                compute_dtype=jnp.float32):
    """One-time parameter prep (call at model load, NOT per forward).

    weight: (planes, inplanes) nn.Linear weight (bias=False).
    Returns (wt_padded (Kp, Np), shift_padded (1, Np), planes).
    BN scale is folded into the weight; lane dims are zero-padded to multiples of 128.
    """
    planes, inplanes = weight.shape
    scale = gamma.astype(jnp.float32) * jax.lax.rsqrt(
        running_var.astype(jnp.float32) + eps)
    shift = beta.astype(jnp.float32) - running_mean.astype(jnp.float32) * scale
    wt = (weight.astype(jnp.float32) * scale[:, None]).T        # (inplanes, planes)

    kp = _round_up(inplanes, 128)
    np_ = _round_up(planes, 128)
    wt_p = jnp.zeros((kp, np_), compute_dtype).at[:inplanes, :planes].set(
        wt.astype(compute_dtype))
    shift_p = jnp.zeros((1, np_), jnp.float32).at[0, :planes].set(shift)
    return wt_p, shift_p, planes


@functools.partial(jax.jit, static_argnames=("planes", "out_dtype"))
def basic_block_mlp_apply(x, wt_p, shift_p, planes, out_dtype=jnp.float32):
    """Fused fc -> bn(eval) -> relu.  x: (B, inplanes)."""
    B, inplanes = x.shape
    kp, np_ = wt_p.shape
    compute_dtype = wt_p.dtype

    if x.dtype != compute_dtype:
        x = x.astype(compute_dtype)

    bp = _round_up(B, 8)
    if (bp, kp) != (B, inplanes):
        x_p = jnp.zeros((bp, kp), compute_dtype).at[:B, :inplanes].set(x)
    else:
        x_p = x

    # Tile sizes derived from (padded) shapes; all lane dims are multiples of 128.
    tm = _pick_tile(bp, (256, 128, 64, 32, 16, 8))
    tn = _pick_tile(np_, (512, 256, 128))
    tk = _pick_tile(kp, (512, 256, 128))

    out = pl.pallas_call(
        _block_kernel,
        out_shape=jax.ShapeDtypeStruct((bp, np_), out_dtype),
        grid_spec=pltpu.PrefetchScalarGridSpec(
            num_scalar_prefetch=0,
            grid=(bp // tm, np_ // tn, kp // tk),
            in_specs=[
                pl.BlockSpec((tm, tk), lambda i, j, k: (i, k)),
                pl.BlockSpec((tk, tn), lambda i, j, k: (k, j)),
                pl.BlockSpec((1, tn), lambda i, j, k: (0, j)),
            ],
            out_specs=pl.BlockSpec((tm, tn), lambda i, j, k: (i, j)),
            scratch_shapes=[pltpu.VMEM((tm, tn), jnp.float32)],
        ),
        compiler_params=pltpu.CompilerParams(
            dimension_semantics=("parallel", "parallel", "arbitrary"),
        ),
    )(x_p, wt_p, shift_p)

    return out[:B, :planes]


def reference(x, weight, gamma, beta, running_mean, running_var, eps=1e-5):
    y = x @ weight.T
    y = (y - running_mean) / jnp.sqrt(running_var + eps) * gamma + beta
    return jnp.maximum(y, 0.0)


if __name__ == "__main__":
    key = jax.random.PRNGKey(0)
    B, inplanes, planes = 8, 32, 32

    kx, kw, kg, kb, km, kv = jax.random.split(key, 6)
    x = jax.random.normal(kx, (B, inplanes), dtype=jnp.float32)
    # Deterministic synthetic params (shapes per nn.Linear(bias=False) / nn.BatchNorm1d)
    weight = jax.random.normal(kw, (planes, inplanes), dtype=jnp.float32) * (
        1.0 / jnp.sqrt(inplanes * 1.0))
    gamma = 1.0 + 0.1 * jax.random.normal(kg, (planes,), dtype=jnp.float32)
    beta = 0.1 * jax.random.normal(kb, (planes,), dtype=jnp.float32)
    running_mean = 0.1 * jax.random.normal(km, (planes,), dtype=jnp.float32)
    running_var = jnp.abs(1.0 + 0.1 * jax.random.normal(kv, (planes,), dtype=jnp.float32))

    ref = reference(x, weight, gamma, beta, running_mean, running_var)

    # f32 MXU-input path (safe on all chips), tight tolerance.
    wt_p, shift_p, n_out = fold_params(weight, gamma, beta, running_mean, running_var,
                                       compute_dtype=jnp.float32)
    out = jax.block_until_ready(basic_block_mlp_apply(x, wt_p, shift_p, n_out))
    assert out.shape == (B, planes)
    assert jnp.allclose(out, ref, atol=1e-5, rtol=1e-5), "f32 mismatch vs reference"

    # bf16 MXU-input path (preferred on v6e/v7x); accumulation + epilogue stay f32.
    wt_bf, shift_bf, n_out = fold_params(weight, gamma, beta, running_mean, running_var,
                                         compute_dtype=jnp.bfloat16)
    out_bf = jax.block_until_ready(basic_block_mlp_apply(x, wt_bf, shift_bf, n_out))
    assert out_bf.shape == (B, planes)
    assert jnp.allclose(out_bf, ref, atol=7.5e-2, rtol=7.5e-2), "bf16 mismatch vs reference"

    print("KERNEL_OK")
</pallas_src>

<mosaic_0001>
module attributes {stable_mosaic.version = 11 : i64} {
  func.func @_block_kernel(%arg0: i32, %arg1: i32, %arg2: i32, %arg3: memref<8x128xf32, #tpu.memory_space<vmem>>, %arg4: memref<128x128xf32, #tpu.memory_space<vmem>>, %arg5: memref<1x128xf32, #tpu.memory_space<vmem>>, %arg6: memref<8x128xf32, #tpu.memory_space<vmem>>, %arg7: memref<8x128xf32, #tpu.memory_space<vmem>>) attributes {dimension_semantics = [#tpu.dimension_semantics<parallel>, #tpu.dimension_semantics<parallel>, #tpu.dimension_semantics<arbitrary>], iteration_bounds = array<i64: 1, 1, 1>, scalar_prefetch = 0 : i64, scratch_operands = 1 : i64, tpu.core_type = #tpu.core_type<tc>, window_params = [{transform_indices = @transform_0, window_bounds = array<i64: 8, 128>}, {transform_indices = @transform_1, window_bounds = array<i64: 128, 128>}, {transform_indices = @transform_2, window_bounds = array<i64: 1, 128>}, {transform_indices = @transform_3, window_bounds = array<i64: 8, 128>}]} {
    %c0_i32 = arith.constant 0 : i32
    %0 = arith.cmpi eq, %arg2, %c0_i32 : i32
    %1 = arith.extui %0 : i1 to i32
    %c0_i32_0 = arith.constant 0 : i32
    %2 = arith.cmpi ne, %1, %c0_i32_0 : i32
    scf.if %2 {
      %cst_10 = arith.constant 0.000000e+00 : f32
      %12 = vector.broadcast %cst_10 : f32 to vector<8x128xf32>
      %c0_11 = arith.constant 0 : index
      %c0_12 = arith.constant 0 : index
      %13 = vector.load %arg7[%c0_11, %c0_12] : memref<8x128xf32, #tpu.memory_space<vmem>>, vector<8x128xf32>
      tpu.vector_store %arg7[%c0_11, %c0_12], %12 {strides = array<i32>} : memref<8x128xf32, #tpu.memory_space<vmem>>, vector<8x128xf32>,
    } else {
    }
    %c0 = arith.constant 0 : index
    %c0_1 = arith.constant 0 : index
    %3 = vector.load %arg7[%c0, %c0_1] : memref<8x128xf32, #tpu.memory_space<vmem>>, vector<8x128xf32>
    %c0_2 = arith.constant 0 : index
    %c0_3 = arith.constant 0 : index
    %4 = vector.load %arg3[%c0_2, %c0_3] : memref<8x128xf32, #tpu.memory_space<vmem>>, vector<8x128xf32>
    %c0_4 = arith.constant 0 : index
    %c0_5 = arith.constant 0 : index
    %5 = vector.load %arg4[%c0_4, %c0_5] : memref<128x128xf32, #tpu.memory_space<vmem>>, vector<128x128xf32>
    %cst = arith.constant dense<0.000000e+00> : vector<8x128xf32>
    %6 = tpu.matmul %4, %5, %cst {dimension_numbers = #tpu.dot_dimension_numbers<[1], [0], [0], [1], [0, 0, 1, 1], [], []>} : vector<8x128xf32>, vector<128x128xf32>, vector<8x128xf32> -> vector<8x128xf32>
    %7 = arith.addf %3, %6 : vector<8x128xf32>
    %c0_6 = arith.constant 0 : index
    %c0_7 = arith.constant 0 : index
    %8 = vector.load %arg7[%c0_6, %c0_7] : memref<8x128xf32, #tpu.memory_space<vmem>>, vector<8x128xf32>
    tpu.vector_store %arg7[%c0_6, %c0_7], %7 {strides = array<i32>} : memref<8x128xf32, #tpu.memory_space<vmem>>, vector<8x128xf32>,
    %c0_i32_8 = arith.constant 0 : i32
    %9 = arith.cmpi eq, %arg2, %c0_i32_8 : i32
    %10 = arith.extui %9 : i1 to i32
    %c0_i32_9 = arith.constant 0 : i32
    %11 = arith.cmpi ne, %10, %c0_i32_9 : i32
    scf.if %11 {
      %c0_10 = arith.constant 0 : index
      %c0_11 = arith.constant 0 : index
      %12 = vector.load %arg7[%c0_10, %c0_11] : memref<8x128xf32, #tpu.memory_space<vmem>>, vector<8x128xf32>
      %c0_12 = arith.constant 0 : index
      %c0_13 = arith.constant 0 : index
      %13 = vector.load %arg5[%c0_12, %c0_13] : memref<1x128xf32, #tpu.memory_space<vmem>>, vector<1x128xf32>
      %14 = vector.broadcast %13 : vector<1x128xf32> to vector<8x128xf32>
      %15 = arith.addf %12, %14 : vector<8x128xf32>
      %cst_14 = arith.constant 0.000000e+00 : f32
      %16 = vector.broadcast %cst_14 : f32 to vector<8x128xf32>
      %17 = arith.maximumf %15, %16 : vector<8x128xf32>
      %c0_15 = arith.constant 0 : index
      %c0_16 = arith.constant 0 : index
      %18 = vector.load %arg6[%c0_15, %c0_16] : memref<8x128xf32, #tpu.memory_space<vmem>>, vector<8x128xf32>
      tpu.vector_store %arg6[%c0_15, %c0_16], %17 {strides = array<i32>} : memref<8x128xf32, #tpu.memory_space<vmem>>, vector<8x128xf32>,
    } else {
    }
    return
  }
  func.func @transform_0(%arg0: i32, %arg1: i32, %arg2: i32) -> (i32, i32) {
    %c0_i32 = arith.constant 0 : i32
    return %arg0, %arg2 : i32, i32
  }
  func.func @transform_1(%arg0: i32, %arg1: i32, %arg2: i32) -> (i32, i32) {
    %c0_i32 = arith.constant 0 : i32
    return %arg2, %arg1 : i32, i32
  }
  func.func @transform_2(%arg0: i32, %arg1: i32, %arg2: i32) -> (i32, i32) {
    %c0_i32 = arith.constant 0 : i32
    %c0_i32_0 = arith.constant 0 : i32
    return %c0_i32, %arg1 : i32, i32
  }
  func.func @transform_3(%arg0: i32, %arg1: i32, %arg2: i32) -> (i32, i32) {
    %c0_i32 = arith.constant 0 : i32
    return %arg0, %arg1 : i32, i32
  }
}

</mosaic_0001>

<bundles_post_ra>
// kernel: basic_block_mlp_apply.1
= control target key start
LH: loop header
LB: loop body
LE: loop exit
PB: predicated region body
PF: predicated region fallthrough
CT: control target
= control target key end

     0   :  { %8 = vsyncpa [#allocation4], 0  ;;  %s294_s0 = inlined_call_operand.vmem [shape: f32[8,128], index: 0, kind: input, shape index: {}]   ;;  %s295_s1 = inlined_call_operand.hbm [shape: f32[128,128], index: 1, kind: input, shape index: {}]   ;;  %s296_s2 = inlined_call_operand.vmem [shape: f32[1,128], index: 2, kind: input, shape index: {}]   ;;  %s297_s3 = inlined_call_operand.hbm [shape: f32[8,128], index: 3, kind: output, shape index: {}]  }
   0x1   :  { %9 = vsyncpa [#allocation5], 0  ;;  %s256_s12 = smov [#allocation3]  }
   0x2   :  { %s17_s13 = sshll.u32 %s256_s12, 4  ;;  %s18_s13 = int_to_ptr.vmem [resolvable:$true] %s17_s13 }
   0x3   :  { %s220_s14 = scalar_lea.vmem %s18_s13, 2048  ;;  %p225_p1 = scmp.lt.s32.totalorder %s18_s13, %s18_s13 }
   0x4   :  { %p221_p0 = scmp.ne.s32.totalorder %s18_s13, %s220_s14  ;;  %p226_p2 = scmp.lt.s32.totalorder %s220_s14, %s220_s14 }
   0x6   :  { %p227_p3 = por %p226_p2, %p225_p1 }
   0x8   :  { %p228_p4 = pnand %p227_p3, %p221_p0 }
   0xa   :  { %231 = shalt.err (!%p228_p4)
}
   0xb   :  { %s257_s15 = smov 128   ;;  %s258_s16 = smov 8  }
   0xc   :  { %23 = dma.hbm_to_vmem [thread:$0]  %s295_s1, 2048, %s18_s13, [#allocation4], %s257_s15, %s257_s15, %s258_s16  }
   0xd   :  { %252 = dma.done.wait [#allocation4], 2048  }
   0xe   :  { %253 = vsyncadd [#allocation4], 4294965248  ;;  %v259_v0 = vmov 0.0   ;;  %vm260_vm0 = vmmov 0   ;;  %v51_v1 = vld [vmem:[#allocation3 + $0x78] sm:$0xff]  ;;  %v50_v2 = vld [vmem:[#allocation3 + $0x70] sm:$0xff] }
   0xf   :  { %171 = vmatprep.subr.mxu0 %v259_v0  ;;  %203 = vmatprep.mubr.msk.f32.mxu0 %vm260_vm0, %v259_v0  ;;  %v49_v3 = vld [vmem:[#allocation3 + $0x68] sm:$0xff]  ;;  %v48_v4 = vld [vmem:[#allocation3 + $0x60] sm:$0xff]  ;;  %v47_v5 = vld [vmem:[#allocation3 + $0x58] sm:$0xff]  ;;  %s261_s22 = smov [#allocation6]  }
  0x10   :  { %172 = vmatpush3.msra.mxu0 %v51_v1  ;;  %v46_v6 = vld [vmem:[#allocation3 + $0x50] sm:$0xff]  ;;  %v45_v7 = vld [vmem:[#allocation3 + $0x48] sm:$0xff]  ;;  %v44_v8 = vld [vmem:[#allocation3 + $0x40] sm:$0xff]  ;;  %s144_s23 = sshll.u32 %s261_s22, 4  ;;  %s145_s23 = int_to_ptr.vmem [resolvable:$true] %s144_s23 }
  0x11   :  { %173 = vmatprep.subr.mxu0 %v259_v0  ;;  %v43_v9 = vld [vmem:[#allocation3 + $0x38] sm:$0xff]  ;;  %v42_v10 = vld [vmem:[#allocation3 + $0x30] sm:$0xff]  ;;  %v41_v11 = vld [vmem:[#allocation3 + $0x28] sm:$0xff]  ;;  %s232_s24 = scalar_lea.vmem %s145_s23, 128  ;;  %p237_p6 = scmp.lt.s32.totalorder %s145_s23, %s145_s23 }
  0x12   :  { %174 = vmatpush3.msra.mxu0 %v50_v2  ;;  %v40_v12 = vld [vmem:[#allocation3 + $0x20] sm:$0xff]  ;;  %v39_v13 = vld [vmem:[#allocation3 + $0x18] sm:$0xff]  ;;  %v38_v14 = vld [vmem:[#allocation3 + $0x10] sm:$0xff]  ;;  %p233_p5 = scmp.ne.s32.totalorder %s145_s23, %s232_s24  ;;  %p238_p7 = scmp.lt.s32.totalorder %s232_s24, %s232_s24 }
  0x13   :  { %175 = vmatprep.subr.mxu0 %v259_v0  ;;  %v37_v15 = vld [vmem:[#allocation3 + $0x8] sm:$0xff]  ;;  %v36_v16 = vld [vmem:[#allocation3] sm:$0xff] }
  0x14   :  { %176 = vmatpush3.msra.mxu0 %v49_v3  ;;  %v35_v17 = vld [vmem:[%s294_s0] sm:$0xff]  ;;  %p239_p8 = por %p238_p7, %p237_p6 }
  0x15   :  { %177 = vmatprep.subr.mxu0 %v259_v0  ;;  %v153_v18 = vld [vmem:[%s296_s2] ss:$0 sm:$0xff] }
  0x16   :  { %178 = vmatpush3.msra.mxu0 %v48_v4  ;;  %p240_p9 = pnand %p239_p8, %p233_p5 }
  0x17   :  { %179 = vmatprep.subr.mxu0 %v259_v0 }
  0x18   :  { %180 = vmatpush3.msra.mxu0 %v47_v5 }
  0x19   :  { %181 = vmatprep.subr.mxu0 %v259_v0 }
  0x1a   :  { %182 = vmatpush3.msra.mxu0 %v46_v6 }
  0x1b   :  { %183 = vmatprep.subr.mxu0 %v259_v0 }
  0x1c   :  { %184 = vmatpush3.msra.mxu0 %v45_v7 }
  0x1d   :  { %185 = vmatprep.subr.mxu0 %v259_v0 }
  0x1e   :  { %186 = vmatpush3.msra.mxu0 %v44_v8 }
  0x1f   :  { %187 = vmatprep.subr.mxu0 %v259_v0 }
  0x20   :  { %188 = vmatpush3.msra.mxu0 %v43_v9 }
  0x21   :  { %189 = vmatprep.subr.mxu0 %v259_v0 }
  0x22   :  { %190 = vmatpush3.msra.mxu0 %v42_v10 }
  0x23   :  { %191 = vmatprep.subr.mxu0 %v259_v0 }
  0x24   :  { %192 = vmatpush3.msra.mxu0 %v41_v11 }
  0x25   :  { %193 = vmatprep.subr.mxu0 %v259_v0 }
  0x26   :  { %194 = vmatpush3.msra.mxu0 %v40_v12 }
  0x27   :  { %195 = vmatprep.subr.mxu0 %v259_v0 }
  0x28   :  { %196 = vmatpush3.msra.mxu0 %v39_v13 }
  0x29   :  { %197 = vmatprep.subr.mxu0 %v259_v0 }
  0x2a   :  { %198 = vmatpush3.msra.mxu0 %v38_v14 }
  0x2b   :  { %199 = vmatprep.subr.mxu0 %v259_v0 }
  0x2c   :  { %200 = vmatpush3.msra.mxu0 %v37_v15 }
  0x2d   :  { %201 = vmatprep.subr.mxu0 %v259_v0 }
  0x2e   :  { %202 = vmatpush3.msra.mxu0 %v36_v16 }
  0x2f   :  { %204 = vmatmul.mubr.f32.vlgmr.msra.gmra.mxu0 %v35_v17 }
  0xef   :  { %v118_v19 = vpop.f32.mrf.mxu0 }
  0xf0   :  { %v135_v20 = vadd.f32 %v153_v18, %v118_v19 }
  0xf1   :  { %v205_v21 = vpop.f32.mrf.mxu0 }
  0xf2   :  { %v136_v22 = vmax.f32 %v135_v20, 0.0 }
  0xf4   :  { %137 = vst [vmem:[#allocation6] sm:$0xff] %v136_v22 }
  0xf5   :  { %243 = shalt.err (!%p240_p9)
}
  0xf6   :  { %147 = dma.vmem_to_hbm [thread:$0]  %s145_s23, 128, %s297_s3, [#allocation5]  }
  0xf7   :  { %254 = dma.done.wait [#allocation5], 128  }
  0xf8   :  { %255 = vsyncadd [#allocation5], 4294967168 }
  0xf9   :  { %151 = vsyncpa [#allocation4], 1 }
  0xfa   :  { %152 = vsyncpa [#allocation5], 1 }

</bundles_post_ra>
